<compile_context>
chip_gen: v5e
topology: v5e:2x2
jax: 0.10.0
libtpu: 0.0.40
codegen_flags: <defaults>
</compile_context>

<pallas_src>
import functools
import math

import jax
import jax.numpy as jnp
from jax.experimental import pallas as pl
from jax.experimental.pallas import tpu as pltpu


def build_pe_table(max_len: int, dim2: int) -> jnp.ndarray:
    """Replicates the PyTorch __init__ pe buffer exactly (shape (max_len, dim2)).

    Note: intentionally keeps the module's asymmetric div terms
    (arange(0,dim2,2) for sin, arange(1,dim2,2) for cos).
    """
    pos = jnp.arange(max_len, dtype=jnp.float32)[:, None]                 # (max_len, 1)
    div0 = jnp.exp(jnp.arange(0, dim2, 2, dtype=jnp.float32)
                   * -(math.log(10000.0) / dim2))
    div1 = jnp.exp(jnp.arange(1, dim2, 2, dtype=jnp.float32)
                   * -(math.log(10000.0) / dim2))
    pe = jnp.zeros((max_len, dim2), dtype=jnp.float32)
    pe = pe.at[:, 0::2].set(jnp.sin(pos * div0))
    pe = pe.at[:, 1::2].set(jnp.cos(pos * div1))
    return pe


def _pick_tile_c(B: int, C: int, L: int, itemsize: int = 4,
                 target_block_bytes: int = 2 << 20) -> int:
    """Largest sublane-aligned channel tile whose (B, TILE_C, L) block ~= target."""
    row_bytes = B * L * itemsize
    tile = max(1, target_block_bytes // row_bytes)
    if tile >= C:
        return C                           # full channel axis: no alignment constraint
    tile = max(8, (tile // 8) * 8)         # sublane-aligned block dim
    return min(C, tile)


def _pe_bn_kernel(emb_ref, pe_ref, g_ref, b_ref, out_ref, *, scale, inv_n, eps):
    # Scale + add positional encoding (PE broadcast over the batch axis).
    x = emb_ref[...].astype(jnp.float32) * scale + pe_ref[...][None, :, :]

    # Single-sweep per-channel batch stats over (B, L): var = E[x^2] - mean^2.
    s1 = jnp.sum(x, axis=(0, 2), keepdims=True)           # (1, TILE_C, 1)
    s2 = jnp.sum(x * x, axis=(0, 2), keepdims=True)       # (1, TILE_C, 1)
    mean = s1 * inv_n
    var = jnp.maximum(s2 * inv_n - mean * mean, 0.0)       # biased variance
    inv = jax.lax.rsqrt(var + eps)

    # Fold the affine into the normalization: out = x * a + (beta - mean * a).
    a = g_ref[...][None, :, :] * inv                       # (1, TILE_C, 1)
    b = b_ref[...][None, :, :] - mean * a                  # (1, TILE_C, 1)
    out_ref[...] = x * a + b


def positional_encoding_forward(emb, pe_full, gamma, beta, *, dim2, eps=1e-5):
    """Forward pass (step=None path):
         out = BatchNorm1d( emb * sqrt(dim2) + pe[:, :emb.shape[1]] )
       emb:     (B, C, L) float  (C = dim1, L = dim2)
       pe_full: (max_len, L) float32 (PE buffer; sliced to first C rows here)
       gamma/beta: (C,) float32 (BatchNorm affine params)
       returns: (B, C, L) float32
    """
    B, C, L = emb.shape
    assert L == dim2, f"last dim {L} must equal dim2={dim2}"
    assert C <= pe_full.shape[0], "emb.shape[1] exceeds max_len of the PE buffer"
    scale = math.sqrt(dim2)
    inv_n = 1.0 / float(B * L)

    pe_slab = pe_full[:C, :].astype(jnp.float32)            # == pe[:, :emb.shape[1]]
    gamma2d = gamma.reshape(C, 1).astype(jnp.float32)
    beta2d = beta.reshape(C, 1).astype(jnp.float32)

    tile_c = _pick_tile_c(B, C, L)
    grid = (pl.cdiv(C, tile_c),)

    kernel = functools.partial(_pe_bn_kernel, scale=scale, inv_n=inv_n, eps=eps)

    n_elem = B * C * L
    cost = pl.CostEstimate(
        flops=10 * n_elem,
        transcendentals=C,
        bytes_accessed=(emb.size * emb.dtype.itemsize   # read emb
                        + n_elem * 4                    # write out
                        + C * L * 4 + 2 * C * 4),       # pe + gamma + beta
    )

    return pl.pallas_call(
        kernel,
        out_shape=jax.ShapeDtypeStruct((B, C, L), jnp.float32),
        grid=grid,
        in_specs=[
            pl.BlockSpec((B, tile_c, L), lambda c: (0, c, 0)),   # emb block
            pl.BlockSpec((tile_c, L), lambda c: (c, 0)),         # PE slab (per-channel)
            pl.BlockSpec((tile_c, 1), lambda c: (c, 0)),         # gamma
            pl.BlockSpec((tile_c, 1), lambda c: (c, 0)),         # beta
        ],
        out_specs=pl.BlockSpec((B, tile_c, L), lambda c: (0, c, 0)),
        compiler_params=pltpu.CompilerParams(
            dimension_semantics=("parallel",),
            vmem_limit_bytes=32 * 1024 * 1024,
        ),
        cost_estimate=cost,
    )(emb, pe_slab, gamma2d, beta2d)


def reference_forward(emb, pe_full, gamma, beta, *, dim2, eps=1e-5):
    """Pure-JAX reference (two-pass biased variance, like PyTorch BatchNorm1d)."""
    B, C, L = emb.shape
    x = emb.astype(jnp.float32) * math.sqrt(dim2) + pe_full[None, :C, :]
    mean = jnp.mean(x, axis=(0, 2), keepdims=True)
    var = jnp.mean(jnp.square(x - mean), axis=(0, 2), keepdims=True)
    xhat = (x - mean) * jax.lax.rsqrt(var + eps)
    return xhat * gamma.reshape(1, C, 1) + beta.reshape(1, C, 1)


if __name__ == "__main__":
    # Small shapes consistent with the module: emb is (B, dim1, dim2).
    # dim2 = 128 keeps the last (lane) dimension dense without any transpose.
    B, dim1, dim2 = 4, 16, 128
    max_len = 64

    key = jax.random.PRNGKey(0)
    emb = jax.random.normal(key, (B, dim1, dim2), dtype=jnp.float32)

    # Deterministic parameter init (matches a fresh nn.BatchNorm1d(dim1)):
    gamma = jnp.ones((dim1,), dtype=jnp.float32)
    beta = jnp.zeros((dim1,), dtype=jnp.float32)
    pe_full = build_pe_table(max_len, dim2)

    # TODO(synk): the `step is not None` branch (emb + pe[step]) is not exercised here.
    out = positional_encoding_forward(emb, pe_full, gamma, beta, dim2=dim2)
    out = jax.block_until_ready(out)

    ref = reference_forward(emb, pe_full, gamma, beta, dim2=dim2)
    assert out.shape == (B, dim1, dim2) and out.dtype == jnp.float32
    assert jnp.allclose(out, ref, atol=1e-4, rtol=1e-4)

    print("KERNEL_OK")
</pallas_src>

<mosaic_0001>
module attributes {stable_mosaic.version = 11 : i64} {
  func.func @_pe_bn_kernel(%arg0: i32, %arg1: memref<4x16x128xf32, #tpu.memory_space<vmem>>, %arg2: memref<16x128xf32, #tpu.memory_space<vmem>>, %arg3: memref<16x1xf32, #tpu.memory_space<vmem>>, %arg4: memref<16x1xf32, #tpu.memory_space<vmem>>, %arg5: memref<4x16x128xf32, #tpu.memory_space<vmem>>) attributes {dimension_semantics = [#tpu.dimension_semantics<parallel>], iteration_bounds = array<i64: 1>, scalar_prefetch = 0 : i64, scratch_operands = 0 : i64, tpu.core_type = #tpu.core_type<tc>, window_params = [{transform_indices = @transform_0, window_bounds = array<i64: 4, 16, 128>}, {transform_indices = @transform_1, window_bounds = array<i64: 16, 128>}, {transform_indices = @transform_2, window_bounds = array<i64: 16, 1>}, {transform_indices = @transform_3, window_bounds = array<i64: 16, 1>}, {transform_indices = @transform_4, window_bounds = array<i64: 4, 16, 128>}]} {
    %c0 = arith.constant 0 : index
    %c0_0 = arith.constant 0 : index
    %c0_1 = arith.constant 0 : index
    %0 = vector.load %arg1[%c0, %c0_0, %c0_1] : memref<4x16x128xf32, #tpu.memory_space<vmem>>, vector<4x16x128xf32>
    %cst = arith.constant 11.3137083 : f32
    %1 = vector.broadcast %cst : f32 to vector<4x16x128xf32>
    %2 = arith.mulf %0, %1 : vector<4x16x128xf32>
    %c0_2 = arith.constant 0 : index
    %c0_3 = arith.constant 0 : index
    %3 = vector.load %arg2[%c0_2, %c0_3] : memref<16x128xf32, #tpu.memory_space<vmem>>, vector<16x128xf32>
    %4 = vector.shape_cast %3 : vector<16x128xf32> to vector<1x16x128xf32>
    %5 = vector.broadcast %4 : vector<1x16x128xf32> to vector<4x16x128xf32>
    %6 = arith.addf %2, %5 : vector<4x16x128xf32>
    %cst_4 = arith.constant dense<0.000000e+00> : vector<16xf32>
    %7 = vector.multi_reduction <add>, %6, %cst_4 [0, 2] : vector<4x16x128xf32> to vector<16xf32>
    %8 = vector.shape_cast %7 : vector<16xf32> to vector<1x16x1xf32>
    %9 = arith.mulf %6, %6 : vector<4x16x128xf32>
    %cst_5 = arith.constant dense<0.000000e+00> : vector<16xf32>
    %10 = vector.multi_reduction <add>, %9, %cst_5 [0, 2] : vector<4x16x128xf32> to vector<16xf32>
    %11 = vector.shape_cast %10 : vector<16xf32> to vector<1x16x1xf32>
    %cst_6 = arith.constant 0.001953125 : f32
    %12 = vector.broadcast %cst_6 : f32 to vector<1x16x1xf32>
    %13 = arith.mulf %8, %12 : vector<1x16x1xf32>
    %cst_7 = arith.constant 0.001953125 : f32
    %14 = vector.broadcast %cst_7 : f32 to vector<1x16x1xf32>
    %15 = arith.mulf %11, %14 : vector<1x16x1xf32>
    %16 = arith.mulf %13, %13 : vector<1x16x1xf32>
    %17 = arith.subf %15, %16 : vector<1x16x1xf32>
    %cst_8 = arith.constant 0.000000e+00 : f32
    %18 = vector.broadcast %cst_8 : f32 to vector<1x16x1xf32>
    %19 = arith.maximumf %17, %18 : vector<1x16x1xf32>
    %cst_9 = arith.constant 9.99999974E-6 : f32
    %20 = vector.broadcast %cst_9 : f32 to vector<1x16x1xf32>
    %21 = arith.addf %19, %20 : vector<1x16x1xf32>
    %22 = math.rsqrt %21 : vector<1x16x1xf32>
    %c0_10 = arith.constant 0 : index
    %c0_11 = arith.constant 0 : index
    %23 = vector.load %arg3[%c0_10, %c0_11] : memref<16x1xf32, #tpu.memory_space<vmem>>, vector<16x1xf32>
    %24 = vector.shape_cast %23 : vector<16x1xf32> to vector<1x16x1xf32>
    %25 = arith.mulf %24, %22 : vector<1x16x1xf32>
    %c0_12 = arith.constant 0 : index
    %c0_13 = arith.constant 0 : index
    %26 = vector.load %arg4[%c0_12, %c0_13] : memref<16x1xf32, #tpu.memory_space<vmem>>, vector<16x1xf32>
    %27 = vector.shape_cast %26 : vector<16x1xf32> to vector<1x16x1xf32>
    %28 = arith.mulf %13, %25 : vector<1x16x1xf32>
    %29 = arith.subf %27, %28 : vector<1x16x1xf32>
    %30 = vector.broadcast %25 : vector<1x16x1xf32> to vector<4x16x128xf32>
    %31 = arith.mulf %6, %30 : vector<4x16x128xf32>
    %32 = vector.broadcast %29 : vector<1x16x1xf32> to vector<4x16x128xf32>
    %33 = arith.addf %31, %32 : vector<4x16x128xf32>
    %c0_14 = arith.constant 0 : index
    %c0_15 = arith.constant 0 : index
    %c0_16 = arith.constant 0 : index
    %34 = vector.load %arg5[%c0_14, %c0_15, %c0_16] : memref<4x16x128xf32, #tpu.memory_space<vmem>>, vector<4x16x128xf32>
    tpu.vector_store %arg5[%c0_14, %c0_15, %c0_16], %33 {strides = array<i32>} : memref<4x16x128xf32, #tpu.memory_space<vmem>>, vector<4x16x128xf32>,
    return
  }
  func.func @transform_0(%arg0: i32) -> (i32, i32, i32) {
    %c0_i32 = arith.constant 0 : i32
    %c0_i32_0 = arith.constant 0 : i32
    %c0_i32_1 = arith.constant 0 : i32
    return %c0_i32, %arg0, %c0_i32_0 : i32, i32, i32
  }
  func.func @transform_1(%arg0: i32) -> (i32, i32) {
    %c0_i32 = arith.constant 0 : i32
    %c0_i32_0 = arith.constant 0 : i32
    return %arg0, %c0_i32 : i32, i32
  }
  func.func @transform_2(%arg0: i32) -> (i32, i32) {
    %c0_i32 = arith.constant 0 : i32
    %c0_i32_0 = arith.constant 0 : i32
    return %arg0, %c0_i32 : i32, i32
  }
  func.func @transform_3(%arg0: i32) -> (i32, i32) {
    %c0_i32 = arith.constant 0 : i32
    %c0_i32_0 = arith.constant 0 : i32
    return %arg0, %c0_i32 : i32, i32
  }
  func.func @transform_4(%arg0: i32) -> (i32, i32, i32) {
    %c0_i32 = arith.constant 0 : i32
    %c0_i32_0 = arith.constant 0 : i32
    %c0_i32_1 = arith.constant 0 : i32
    return %c0_i32, %arg0, %c0_i32_0 : i32, i32, i32
  }
}

</mosaic_0001>

<bundles_post_ra>
// kernel: tpu_custom_call.1
= control target key start
LH: loop header
LB: loop body
LE: loop exit
PB: predicated region body
PF: predicated region fallthrough
CT: control target
= control target key end

     0   :  { %9 = vsyncpa [#allocation3], 0  ;;  %s365_s0 = inlined_call_operand.hbm [shape: f32[4,16,128], index: 0, kind: input, shape index: {}]   ;;  %s366_s1 = inlined_call_operand.vmem [shape: f32[16,128], index: 1, kind: input, shape index: {}]   ;;  %s367_s2 = inlined_call_operand.vmem [shape: f32[16,1], index: 2, kind: input, shape index: {}]   ;;  %s368_s3 = inlined_call_operand.vmem [shape: f32[16,1], index: 3, kind: input, shape index: {}]   ;;  %s369_s4 = inlined_call_operand.hbm [shape: f32[4,16,128], index: 4, kind: output, shape index: {}]  }
   0x1   :  { %10 = vsyncpa [#allocation4], 0  ;;  %s15_s17 = sshll.u32 %s365_s0, 4  ;;  %s257_s18 = smov [#allocation2]   ;;  %s16_s17 = int_to_ptr.hbm [resolvable:$true] %s15_s17 }
   0x2   :  { %s17_s19 = sshll.u32 %s257_s18, 4  ;;  %s258_s20 = smov 128   ;;  %s18_s19 = int_to_ptr.vmem [resolvable:$true] %s17_s19 }
   0x3   :  { %s259_s21 = smov 8  }
   0x4   :  { %23 = dma.hbm_to_vmem [thread:$0]  %s16_s17, 1024, %s18_s19, [#allocation3], %s258_s20, %s258_s20, %s259_s21  }
   0x5   :  { %253 = dma.done.wait [#allocation3], 1024  }
   0x6   :  { %254 = vsyncadd [#allocation3], 4294966272  ;;  %v34_v0 = vld [vmem:[#allocation2] sm:$0xff]  ;;  %v36_v1 = vld [vmem:[#allocation2 + $0x10] sm:$0xff]  ;;  %v260_v46 = vmov 0   ;;  %s180_s8 = sshll.u32 %s369_s4, 4  ;;  %s181_s8 = int_to_ptr.hbm [resolvable:$true] %s180_s8 }
   0x7   :  { %v38_v2 = vld [vmem:[#allocation2 + $0x20] sm:$0xff]  ;;  %v40_v3 = vld [vmem:[#allocation2 + $0x30] sm:$0xff]  ;;  %v42_v4 = vmul.f32 11.313708, %v34_v0  ;;  %v44_v5 = vmul.f32 11.313708, %v36_v1  ;;  %198 = vset.pattern.permute.xlu2 %v260_v46  ;;  %199 = vset.pattern.permute.xlu0 %v260_v46 }
   0x8   :  { %v50_v6 = vld [vmem:[%s366_s1] sm:$0xff]  ;;  %v46_v7 = vmul.f32 11.313708, %v38_v2  ;;  %v48_v8 = vmul.f32 11.313708, %v40_v3  ;;  %v35_v9 = vld [vmem:[#allocation2 + $0x8] sm:$0xff]  ;;  %200 = vset.pattern.permute.xlu1 %v260_v46 }
   0x9   :  { %v37_v10 = vld [vmem:[#allocation2 + $0x18] sm:$0xff]  ;;  %v296_v11 = vadd.f32 %v50_v6, %v42_v4  ;;  %v298_v12 = vadd.f32 %v50_v6, %v44_v5  ;;  %v39_v13 = vld [vmem:[#allocation2 + $0x28] sm:$0xff]  ;;  %v43_v15 = vmul.f32 11.313708, %v35_v9 }
   0xa   :  { %v41_v14 = vld [vmem:[#allocation2 + $0x38] sm:$0xff]  ;;  %v45_v16 = vmul.f32 11.313708, %v37_v10  ;;  %v300_v17 = vadd.f32 %v50_v6, %v46_v7  ;;  %v302_v18 = vadd.f32 %v50_v6, %v48_v8  ;;  %v47_v19 = vmul.f32 11.313708, %v39_v13  ;;  %v51_v21 = vld [vmem:[%s366_s1 + $0x8] sm:$0xff] }
   0xb   :  { %v49_v20 = vmul.f32 11.313708, %v41_v14  ;;  %v60_v22 = vadd.f32 %v298_v12, %v296_v11  ;;  %v70_v23 = vmul.f32 %v296_v11, %v296_v11  ;;  %v72_v24 = vmul.f32 %v298_v12, %v298_v12  ;;  %v120_v7 = vld [vmem:[%s367_s2] sm:$0xff] }
   0xc   :  { %v313_v25 = vadd.f32 %v51_v21, %v43_v15  ;;  %v74_v26 = vmul.f32 %v300_v17, %v300_v17  ;;  %v317_v27 = vadd.f32 %v51_v21, %v45_v16  ;;  %v319_v28 = vadd.f32 %v51_v21, %v47_v19  ;;  %v124_v14 = vld [vmem:[%s368_s3] sm:$0xff] }
   0xd   :  { %v61_v29 = vadd.f32 %v60_v22, %v300_v17  ;;  %v76_v30 = vmul.f32 %v302_v18, %v302_v18  ;;  %v78_v31 = vadd.f32 %v72_v24, %v70_v23  ;;  %v331_v37 = vadd.f32 %v51_v21, %v49_v20  ;;  %v121_v21 = vld [vmem:[%s367_s2 + $0x8] sm:$0xff]  ;;  %s261_s2 = smov [#allocation5]  }
   0xe   :  { %v71_v32 = vmul.f32 %v313_v25, %v313_v25  ;;  %v65_v33 = vadd.f32 %v317_v27, %v313_v25  ;;  %v73_v34 = vmul.f32 %v317_v27, %v317_v27  ;;  %v75_v38 = vmul.f32 %v319_v28, %v319_v28  ;;  %v125_v24 = vld [vmem:[%s368_s3 + $0x8] sm:$0xff]  ;;  %s178_s3 = sshll.u32 %s261_s2, 4  ;;  %s179_s3 = int_to_ptr.vmem [resolvable:$true] %s178_s3 }
   0xf   :  { %v62_v35 = vadd.f32 %v61_v29, %v302_v18  ;;  %v79_v36 = vadd.f32 %v78_v31, %v74_v26  ;;  %v77_v42 = vmul.f32 %v331_v37, %v331_v37 }
  0x10   :  { %v83_v39 = vadd.f32 %v73_v34, %v71_v32  ;;  %v66_v41 = vadd.f32 %v65_v33, %v319_v28 }
  0x11   :  { %63 = vadd.xlane.f32.xlu0 %v62_v35  ;;  %v80_v40 = vadd.f32 %v79_v36, %v76_v30 }
  0x12   :  { %v84_v43 = vadd.f32 %v83_v39, %v75_v38  ;;  %v67_v44 = vadd.f32 %v66_v41, %v331_v37 }
  0x13   :  { %81 = vadd.xlane.f32.xlu1 %v80_v40 }
  0x14   :  { %v85_v45 = vadd.f32 %v84_v43, %v77_v42 }
  0x19   :  { %68 = vadd.xlane.f32.xlu0 %v67_v44 }
  0x1b   :  { %86 = vadd.xlane.f32.xlu1 %v85_v45 }
  0x84   :  { %v64_v47 = vpop.xlane.xlu0 %63 }
  0x85   :  { %v88_v48 = vmul.f32 0.001953125, %v64_v47 }
  0x86   :  { %v82_v49 = vpop.xlane.xlu1 %81 }
  0x87   :  { %v92_v50 = vmul.f32 %v88_v48, %v88_v48  ;;  %v90_v51 = vmul.f32 0.001953125, %v82_v49 }
  0x89   :  { %v94_v52 = vsub.f32 %v90_v51, %v92_v50 }
  0x8b   :  { %v96_v53 = vmax.f32 %v94_v52, 0.0 }
  0x8c   :  { %v69_v54 = vpop.xlane.xlu0 %68 }
  0x8d   :  { %v98_v55 = vadd.f32 1e-05, %v96_v53  ;;  %v89_v56 = vmul.f32 0.001953125, %v69_v54 }
  0x8e   :  { %v87_v57 = vpop.xlane.xlu1 %86 }
  0x8f   :  { %201 = vrsqrt.f32 %v98_v55  ;;  %v93_v58 = vmul.f32 %v89_v56, %v89_v56  ;;  %v91_v59 = vmul.f32 0.001953125, %v87_v57  ;;  %vm106_vm1 = vweird.f32 %v98_v55 }
  0x91   :  { %v95_v60 = vsub.f32 %v91_v59, %v93_v58 }
  0x93   :  { %v97_v61 = vmax.f32 %v95_v60, 0.0 }
  0x95   :  { %v202_v62 = vpop.eup %201  ;;  %v99_v63 = vadd.f32 1e-05, %v97_v61 }
  0x96   :  { %v101_v0 = vmul.f32 %v202_v62, %v98_v55  ;;  %vm107_vm0 = vweird.f32 %v202_v62 }
  0x97   :  { %203 = vrsqrt.f32 %v99_v63  ;;  %vm108_vm2 = vmor %vm106_vm1, %vm107_vm0  ;;  %vm116_vm4 = vweird.f32 %v99_v63 }
  0x98   :  { %v102_v1 = vmul.f32 %v202_v62, %v101_v0 }
  0x9a   :  { %v103_v2 = vmul.f32 0.5, %v102_v1 }
  0x9c   :  { %v104_v3 = vsub.f32 1.5, %v103_v2 }
  0x9d   :  { %v204_v4 = vpop.eup %203 }
  0x9e   :  { %v111_v5 = vmul.f32 %v204_v4, %v99_v63  ;;  %v105_v6 = vmul.f32 %v202_v62, %v104_v3  ;;  %vm117_vm3 = vweird.f32 %v204_v4 }
  0x9f   :  { %vm118_vm5 = vmor %vm116_vm4, %vm117_vm3 }
  0xa0   :  { %v112_v8 = vmul.f32 %v204_v4, %v111_v5  ;;  %v109_v9 = vsel %vm108_vm2, %v202_v62, %v105_v6 }
  0xa1   :  { %v122_v10 = vmul.f32 %v120_v7, %v109_v9 }
  0xa2   :  { %v113_v13 = vmul.f32 0.5, %v112_v8 }
  0xa3   :  { %132 = vperm.xlu2 %198, %v122_v10   ;;  %v126_v15 = vmul.f32 %v122_v10, %v88_v48 }
  0xa4   :  { %v114_v16 = vsub.f32 1.5, %v113_v13 }
  0xa5   :  { %v128_v19 = vsub.f32 %v124_v14, %v126_v15 }
  0xa6   :  { %v115_v20 = vmul.f32 %v204_v4, %v114_v16 }
  0xa7   :  { %150 = vperm.xlu0 %199, %v128_v19  }
  0xa8   :  { %v119_v22 = vsel %vm118_vm5, %v204_v4, %v115_v20 }
  0xa9   :  { %v123_v23 = vmul.f32 %v121_v21, %v119_v22 }
  0xab   :  { %137 = vperm.xlu2 %198, %v123_v23   ;;  %v127_v26 = vmul.f32 %v123_v23, %v89_v56 }
  0xad   :  { %v129_v29 = vsub.f32 %v125_v24, %v127_v26 }
  0xaf   :  { %155 = vperm.xlu1 %200, %v129_v29  }
  0xfd   :  { %v133_v30 = vpop.permute.xlu2 %132 }
  0xfe   :  { %v140_v31 = vmul.f32 %v133_v30, %v296_v11  ;;  %v142_v32 = vmul.f32 %v133_v30, %v298_v12  ;;  %v144_v33 = vmul.f32 %v133_v30, %v300_v17  ;;  %v146_v34 = vmul.f32 %v133_v30, %v302_v18 }
 0x105   :  { %v138_v41 = vpop.permute.xlu2 %137 }
 0x106   :  { %v141_v42 = vmul.f32 %v138_v41, %v313_v25  ;;  %v143_v11 = vmul.f32 %v138_v41, %v317_v27  ;;  %v145_v12 = vmul.f32 %v138_v41, %v319_v28  ;;  %v147_v17 = vmul.f32 %v138_v41, %v331_v37 }
 0x119   :  { %v151_v35 = vpop.permute.xlu0 %150 }
 0x11a   :  { %v158_v36 = vadd.f32 %v151_v35, %v140_v31  ;;  %v160_v38 = vadd.f32 %v151_v35, %v142_v32  ;;  %v162_v39 = vadd.f32 %v151_v35, %v144_v33  ;;  %v164_v40 = vadd.f32 %v151_v35, %v146_v34 }
 0x11c   :  { %166 = vst [vmem:[#allocation5] sm:$0xff] %v158_v36 }
 0x11d   :  { %168 = vst [vmem:[#allocation5 + $0x10] sm:$0xff] %v160_v38 }
 0x11e   :  { %170 = vst [vmem:[#allocation5 + $0x20] sm:$0xff] %v162_v39 }
 0x11f   :  { %172 = vst [vmem:[#allocation5 + $0x30] sm:$0xff] %v164_v40 }
 0x121   :  { %v156_v43 = vpop.permute.xlu1 %155 }
 0x122   :  { %v159_v18 = vadd.f32 %v156_v43, %v141_v42  ;;  %v161_v44 = vadd.f32 %v156_v43, %v143_v11  ;;  %v163_v45 = vadd.f32 %v156_v43, %v145_v12  ;;  %v165_v46 = vadd.f32 %v156_v43, %v147_v17 }
 0x124   :  { %167 = vst [vmem:[#allocation5 + $0x8] sm:$0xff] %v159_v18 }
 0x125   :  { %169 = vst [vmem:[#allocation5 + $0x18] sm:$0xff] %v161_v44 }
 0x126   :  { %171 = vst [vmem:[#allocation5 + $0x28] sm:$0xff] %v163_v45 }
 0x127   :  { %173 = vst [vmem:[#allocation5 + $0x38] sm:$0xff] %v165_v46 }
 0x128   :  { %186 = dma.vmem_to_hbm [thread:$0]  %s179_s3, 1024, %s181_s8, [#allocation4], %s258_s20, %s258_s20, %s259_s21  }
 0x129   :  { %255 = dma.done.wait [#allocation4], 1024  }
 0x12a   :  { %256 = vsyncadd [#allocation4], 4294966272 }
 0x12b   :  { %191 = vsyncpa [#allocation3], 1 }
 0x12c   :  { %192 = vsyncpa [#allocation4], 1 }

</bundles_post_ra>
